<compile_context>
chip_gen: v6e
topology: v6e:2x2x1
jax: 0.10.0
libtpu: 0.0.40
codegen_flags: <defaults>
</compile_context>

<pallas_src>
import functools

import jax
import jax.numpy as jnp
from jax import lax
from jax.experimental import pallas as pl
from jax.experimental.pallas import tpu as pltpu


def _round_up(x, m):
    return ((x + m - 1) // m) * m


def _lora_kernel(w0_ref, a_ref, b_ref, out_ref, *,
                 scale, tile_out, a_resident, row_axis, precision):
    # w0_ref / out_ref: (tile_out, tile_in)
    # b_ref:            (rank, tile_in)
    # a_ref:            (a_rows_padded, rank) if a_resident else (tile_out, rank)
    if a_resident:
        # lora_A lives fully in VMEM (DMA'd once for the whole kernel); pick
        # this block's row strip with a cheap in-VMEM dynamic slice.
        start = pl.multiple_of(pl.program_id(row_axis) * tile_out, tile_out)
        a = a_ref[pl.ds(start, tile_out), :]
    else:
        a = a_ref[...]
    ab = jnp.dot(a, b_ref[...], preferred_element_type=jnp.float32,
                 precision=precision)
    # Scale the f32 MXU product (not A): one extra vmul per output vreg hides
    # under the DMA and avoids a low-precision rounding of A*scale.  The
    # widening add against a bf16 W_0 tile is fused (no explicit f32 copy).
    out_ref[...] = (ab * scale + w0_ref[...]).astype(out_ref.dtype)


def _pick_tile(dim, cap, mult):
    """Tile size <= cap and a multiple of `mult`, or the full dim if it fits."""
    if dim <= cap:
        return dim
    return max(mult, (cap // mult) * mult)


def _vmem_capacity_bytes():
    try:
        return int(pltpu.get_tpu_info().vmem_capacity_bytes)
    except Exception:
        return 64 << 20  # conservative fallback (v7x per-TensorCore VMEM)


def lora_forward(w0, lora_a, lora_b, *, scale, enabled,
                 tile_out=None, tile_in=None, donate_w0=False):
    """Pallas implementation of LoraLayer.forward.

    w0:      (features_out, features_in)
    lora_a:  (features_out, rank)
    lora_b:  (rank, features_in)

    donate_w0=True aliases the output with W_0 (in-place merge); for this to
    actually avoid an extra HBM buffer the caller must jit-donate W_0.
    """
    if not enabled:
        return w0

    features_out, features_in = w0.shape
    rank = lora_a.shape[1]
    assert lora_a.shape == (features_out, rank)
    assert lora_b.shape == (rank, features_in)

    w_itemsize = jnp.dtype(w0.dtype).itemsize
    a_itemsize = jnp.dtype(lora_a.dtype).itemsize
    b_itemsize = jnp.dtype(lora_b.dtype).itemsize
    # Sublane multiple: 8 for f32, 16 for bf16, 32 for int8/fp8.
    sublane = max(8, 32 // w_itemsize)
    vmem_cap = _vmem_capacity_bytes()

    # --- Tile selection (cdiv grid: no divisibility requirement) -----------
    if tile_out is None:
        # Squarer tiles amortize the per-step MXU RHS weight reload better
        # than short-and-wide tiles at equal bytes (matters on v7x).
        tile_out = _pick_tile(features_out, 1024, sublane)
    if tile_in is None:
        # One W_0/out tile <= ~1/10 of physical VMEM: the four double-buffered
        # W_0/out buffers then stay under ~40% of VMEM on every generation
        # (~6 MiB tiles on v7x's 64 MiB, ~12 MiB on 128-MiB chips), keeping
        # the per-step DMA long enough to hide the ~0.35 us fixed step cost.
        per_buffer_budget = vmem_cap // 10
        max_tile_in = max(128, per_buffer_budget // max(1, tile_out * w_itemsize))
        tile_in = _pick_tile(features_in, max_tile_in, 128)

    assert tile_out == features_out or tile_out % sublane == 0, (
        f"tile_out must be a multiple of {sublane} (or the full dimension)")
    assert tile_in == features_in or tile_in % 128 == 0, (
        "tile_in must be a multiple of 128 (or the full dimension)")

    n_out = pl.cdiv(features_out, tile_out)
    n_in = pl.cdiv(features_in, tile_in)

    # --- Keep lora_A fully resident in VMEM when it is small ---------------
    # Pad A's rows once (wrapper-side) so the in-kernel pl.ds slice of the
    # edge row-block never reads out of bounds.
    a_rows = n_out * tile_out
    a_vmem_bytes = a_rows * _round_up(rank, 128) * a_itemsize  # lane padding
    a_resident = (2 * a_vmem_bytes) <= (vmem_cap // 8)
    if a_resident and a_rows != features_out:
        lora_a = jnp.pad(lora_a, ((0, a_rows - features_out), (0, 0)))

    # --- Grid ordering ------------------------------------------------------
    # Outer axis = features_in strips (lora_B DMA'd once per strip).  If that
    # axis degenerates to a single block, make features_out outermost so the
    # megacore-shardable axis always has >= 2 blocks (v7x: 2 TCs per chip).
    if n_in >= 2 or n_out == 1:
        grid = (n_in, n_out)
        row_axis = 1
        w0_spec = pl.BlockSpec((tile_out, tile_in), lambda j, i: (i, j))
        b_spec = pl.BlockSpec((rank, tile_in), lambda j, i: (0, j))
        out_spec = pl.BlockSpec((tile_out, tile_in), lambda j, i: (i, j))
        a_spec = (pl.BlockSpec((a_rows, rank), lambda j, i: (0, 0)) if a_resident
                  else pl.BlockSpec((tile_out, rank), lambda j, i: (i, 0)))
    else:
        grid = (n_out, n_in)
        row_axis = 0
        w0_spec = pl.BlockSpec((tile_out, tile_in), lambda i, j: (i, j))
        b_spec = pl.BlockSpec((rank, tile_in), lambda i, j: (0, j))
        out_spec = pl.BlockSpec((tile_out, tile_in), lambda i, j: (i, j))
        a_spec = (pl.BlockSpec((a_rows, rank), lambda i, j: (0, 0)) if a_resident
                  else pl.BlockSpec((tile_out, rank), lambda i, j: (i, 0)))

    # --- VMEM limit / cost hints --------------------------------------------
    tile_bytes = _round_up(tile_out, 8) * _round_up(tile_in, 128) * w_itemsize
    a_need = (2 * a_vmem_bytes if a_resident
              else 2 * _round_up(tile_out, 8) * _round_up(rank, 128) * a_itemsize)
    b_need = 2 * _round_up(rank, 8) * _round_up(tile_in, 128) * b_itemsize
    need = 2 * (2 * tile_bytes) + a_need + b_need   # W_0 + out double-buffered
    vmem_limit = int(min(vmem_cap * 9 // 10, max(2 * need, 32 << 20)))

    cost = pl.CostEstimate(
        flops=2 * features_out * rank * features_in,
        transcendentals=0,
        bytes_accessed=(2 * features_out * features_in * w_itemsize
                        + features_out * rank * a_itemsize
                        + rank * features_in * b_itemsize),
    )

    # Pin the dot precision: exact-ish f32 merge for f32 params (the extra MXU
    # passes are noise at rank<=64), native single-pass for bf16.
    precision = (lax.Precision.HIGHEST
                 if (lora_a.dtype == jnp.float32 and lora_b.dtype == jnp.float32)
                 else lax.Precision.DEFAULT)

    kernel = functools.partial(
        _lora_kernel, scale=float(scale), tile_out=tile_out,
        a_resident=a_resident, row_axis=row_axis, precision=precision)

    return pl.pallas_call(
        kernel,
        out_shape=jax.ShapeDtypeStruct((features_out, features_in), w0.dtype),
        grid_spec=pltpu.PrefetchScalarGridSpec(
            num_scalar_prefetch=0,
            grid=grid,
            in_specs=[w0_spec, a_spec, b_spec],
            out_specs=out_spec,
        ),
        compiler_params=pltpu.CompilerParams(
            dimension_semantics=("parallel", "parallel"),
            vmem_limit_bytes=vmem_limit,
        ),
        cost_estimate=cost,
        input_output_aliases=({0: 0} if donate_w0 else {}),
    )(w0, lora_a, lora_b)


class LoraLayerPallas:
    """Mirror of the PyTorch LoraLayer, parameters held as JAX arrays."""

    def __init__(self, features_in, features_out, rank=1, alphas=1, key=None):
        self.alphas = alphas
        self.scale = rank / self.alphas
        self.enabled = False
        key = jax.random.PRNGKey(0) if key is None else key
        # nn.init.normal_(lora_A); lora_B stays zeros (as in __init__)
        self.lora_A = jax.random.normal(key, (features_out, rank), dtype=jnp.float32)
        self.lora_B = jnp.zeros((rank, features_in), dtype=jnp.float32)

    def __call__(self, W_0):
        return lora_forward(
            W_0, self.lora_A, self.lora_B, scale=self.scale, enabled=self.enabled
        )


if __name__ == "__main__":
    key = jax.random.PRNGKey(0)
    keys = jax.random.split(key, 12)
    HIGH = lax.Precision.HIGHEST

    # ---- Small case (module-sized shapes), via the layer class ------------
    features_in, features_out, rank = 128, 32, 4
    layer = LoraLayerPallas(features_in, features_out, rank=rank, alphas=2,
                            key=keys[0])
    layer.lora_B = jax.random.normal(keys[1], (rank, features_in), jnp.float32)
    layer.enabled = True

    W_0 = jax.random.normal(keys[2], (features_out, features_in), jnp.float32)
    out = jax.block_until_ready(layer(W_0))
    ref = W_0 + jnp.matmul(layer.lora_A, layer.lora_B, precision=HIGH) * layer.scale
    assert out.shape == W_0.shape and out.dtype == W_0.dtype
    assert jnp.allclose(out, ref, atol=1e-3, rtol=1e-3)

    # Disabled path: identity.
    layer.enabled = False
    assert jnp.array_equal(jax.block_until_ready(layer(W_0)), W_0)

    # ---- Awkward shapes: cdiv grid with partial edge blocks (both axes) ---
    Fo, Fi, r = 300, 520, 8
    W2 = jax.random.normal(keys[3], (Fo, Fi), jnp.float32)
    A2 = jax.random.normal(keys[4], (Fo, r), jnp.float32)
    B2 = jax.random.normal(keys[5], (r, Fi), jnp.float32)
    s2 = r / 4
    out2 = jax.block_until_ready(
        lora_forward(W2, A2, B2, scale=s2, enabled=True,
                     tile_out=128, tile_in=256))
    ref2 = W2 + jnp.matmul(A2, B2, precision=HIGH) * s2
    assert jnp.allclose(out2, ref2, atol=1e-3, rtol=1e-3)

    # ---- n_in == 1: exercises the swapped (megacore-friendly) grid order --
    Fo3, Fi3, r3 = 512, 256, 8
    W3 = jax.random.normal(keys[6], (Fo3, Fi3), jnp.float32)
    A3 = jax.random.normal(keys[7], (Fo3, r3), jnp.float32)
    B3 = jax.random.normal(keys[8], (r3, Fi3), jnp.float32)
    s3 = r3 / 4
    out3 = jax.block_until_ready(
        lora_forward(W3, A3, B3, scale=s3, enabled=True, tile_out=128))
    ref3 = W3 + jnp.matmul(A3, B3, precision=HIGH) * s3
    assert jnp.allclose(out3, ref3, atol=1e-3, rtol=1e-3)

    # ---- bf16 case: fused widening add, f32 product scaled before rounding -
    Fo4, Fi4, r4 = 256, 512, 8
    W4 = jax.random.normal(keys[9], (Fo4, Fi4), jnp.bfloat16)
    A4 = jax.random.normal(keys[10], (Fo4, r4), jnp.bfloat16)
    B4 = jax.random.normal(keys[11], (r4, Fi4), jnp.bfloat16)
    s4 = r4 / 4
    out4 = jax.block_until_ready(
        lora_forward(W4, A4, B4, scale=s4, enabled=True))
    ref4 = (W4.astype(jnp.float32)
            + jnp.matmul(A4.astype(jnp.float32), B4.astype(jnp.float32),
                         precision=HIGH) * s4)
    assert out4.dtype == jnp.bfloat16
    assert jnp.allclose(out4.astype(jnp.float32), ref4, atol=0.2, rtol=0.05)

    # In-place-alias path compiles and matches.
    out5 = jax.block_until_ready(
        lora_forward(W3, A3, B3, scale=s3, enabled=True, donate_w0=True))
    assert jnp.allclose(out5, ref3, atol=1e-3, rtol=1e-3)

    print("KERNEL_OK")
</pallas_src>

<mosaic_0001>
module attributes {stable_mosaic.version = 11 : i64} {
  func.func @_lora_kernel(%arg0: i32, %arg1: i32, %arg2: memref<32x128xf32, #tpu.memory_space<vmem>>, %arg3: memref<32x4xf32, #tpu.memory_space<vmem>>, %arg4: memref<4x128xf32, #tpu.memory_space<vmem>>, %arg5: memref<32x128xf32, #tpu.memory_space<vmem>>) attributes {dimension_semantics = [#tpu.dimension_semantics<parallel>, #tpu.dimension_semantics<parallel>], iteration_bounds = array<i64: 1, 1>, scalar_prefetch = 0 : i64, scratch_operands = 0 : i64, tpu.core_type = #tpu.core_type<tc>, window_params = [{transform_indices = @transform_0, window_bounds = array<i64: 32, 128>}, {pipeline_mode = #tpu.pipeline_mode<synchronous>, transform_indices = @transform_1, window_bounds = array<i64: 32, 4>}, {transform_indices = @transform_2, window_bounds = array<i64: 4, 128>}, {transform_indices = @transform_3, window_bounds = array<i64: 32, 128>}]} {
    %c32_i32 = arith.constant 32 : i32
    %0 = arith.muli %arg1, %c32_i32 : i32
    %1 = tpu.assume_multiple %0, 32 : i32
    %2 = arith.index_cast %1 : i32 to index
    %c0 = arith.constant 0 : index
    %3 = vector.load %arg3[%2, %c0] : memref<32x4xf32, #tpu.memory_space<vmem>>, vector<32x4xf32>
    %c0_0 = arith.constant 0 : index
    %c0_1 = arith.constant 0 : index
    %4 = vector.load %arg4[%c0_0, %c0_1] : memref<4x128xf32, #tpu.memory_space<vmem>>, vector<4x128xf32>
    %cst = arith.constant dense<0.000000e+00> : vector<32x128xf32>
    %5 = tpu.matmul %3, %4, %cst {dimension_numbers = #tpu.dot_dimension_numbers<[1], [0], [0], [1], [0, 0, 1, 1], [], []>, precision = #tpu.contract_precision<fp32>} : vector<32x4xf32>, vector<4x128xf32>, vector<32x128xf32> -> vector<32x128xf32>
    %cst_2 = arith.constant 2.000000e+00 : f32
    %6 = vector.broadcast %cst_2 : f32 to vector<32x128xf32>
    %7 = arith.mulf %5, %6 : vector<32x128xf32>
    %c0_3 = arith.constant 0 : index
    %c0_4 = arith.constant 0 : index
    %8 = vector.load %arg2[%c0_3, %c0_4] : memref<32x128xf32, #tpu.memory_space<vmem>>, vector<32x128xf32>
    %9 = arith.addf %7, %8 : vector<32x128xf32>
    %c0_5 = arith.constant 0 : index
    %c0_6 = arith.constant 0 : index
    %10 = vector.load %arg5[%c0_5, %c0_6] : memref<32x128xf32, #tpu.memory_space<vmem>>, vector<32x128xf32>
    tpu.vector_store %arg5[%c0_5, %c0_6], %9 {strides = array<i32>} : memref<32x128xf32, #tpu.memory_space<vmem>>, vector<32x128xf32>,
    return
  }
  func.func @transform_0(%arg0: i32, %arg1: i32) -> (i32, i32) {
    %c0_i32 = arith.constant 0 : i32
    return %arg1, %arg0 : i32, i32
  }
  func.func @transform_1(%arg0: i32, %arg1: i32) -> (i32, i32) {
    %c0_i32 = arith.constant 0 : i32
    %c0_i32_0 = arith.constant 0 : i32
    %c0_i32_1 = arith.constant 0 : i32
    return %c0_i32, %c0_i32_0 : i32, i32
  }
  func.func @transform_2(%arg0: i32, %arg1: i32) -> (i32, i32) {
    %c0_i32 = arith.constant 0 : i32
    %c0_i32_0 = arith.constant 0 : i32
    return %c0_i32, %arg0 : i32, i32
  }
  func.func @transform_3(%arg0: i32, %arg1: i32) -> (i32, i32) {
    %c0_i32 = arith.constant 0 : i32
    return %arg1, %arg0 : i32, i32
  }
}

</mosaic_0001>

<bundles_post_ra>
// kernel: tpu_custom_call.1
= control target key start
LH: loop header
LB: loop body
LE: loop exit
PB: predicated region body
PF: predicated region fallthrough
CT: control target
= control target key end

     0   :  { %vm35_vm0 = vcmask 1043456   ;;  %vm22_vm1 = vcmask 31744   ;;  %s802_s0 = inlined_call_operand.vmem [shape: f32[32,128], index: 0, kind: input, shape index: {}]   ;;  %s803_s1 = inlined_call_operand.vmem [shape: f32[32,4], index: 1, kind: input, shape index: {}]   ;;  %s804_s2 = inlined_call_operand.vmem [shape: f32[4,128], index: 2, kind: input, shape index: {}]   ;;  %s805_s3 = inlined_call_operand.hbm [shape: f32[32,128], index: 3, kind: output, shape index: {}]  }
   0x1   :  { %v21_v0 = vld [vmem:[%s804_s2] sm:$0xf]  ;;  %v18_v2 = vld [vmem:[%s803_s1 + $0x8] sm:$0xff]  ;;  %v19_v6 = vld [vmem:[%s803_s1 + $0x10] sm:$0xff] }
   0x2   :  { %v17_v1 = vld [vmem:[%s803_s1] sm:$0xff]  ;;  %v37_v3 = vsel %vm35_vm0, %v21_v0, 0  ;;  %v27_v5 = vsel %vm22_vm1, %v18_v2, 0  ;;  %v20_v7 = vld [vmem:[%s803_s1 + $0x18] sm:$0xff]  ;;  %v30_v11 = vsel %vm22_vm1, %v19_v6, 0 }
   0x3   :  { %v24_v4 = vsel %vm22_vm1, %v17_v1, 0  ;;  %v70_v8 = vand.u32 4294901760, %v37_v3  ;;  %v115_v10 = vand.u32 4294901760, %v27_v5 }
   0x4   :  { %v105_v9 = vand.u32 4294901760, %v24_v4 }
   0x5   :  { %8 = vsyncpa [#allocation3], 0  ;;  %v125_v12 = vand.u32 4294901760, %v30_v11  ;;  %v33_v13 = vsel %vm22_vm1, %v20_v7, 0  ;;  %676 = vmatprep.subr.mxu0 %v70_v8  ;;  %v177_v15 = vsub.f32 %v37_v3, %v70_v8  ;;  %v116_v16 = vsub.f32 %v27_v5, %v115_v10  ;;  %v619_v5 = vld [vmem:[%s802_s0 + $0x8] sm:$0xff]  ;;  %s749_s26 = smov [#allocation2]  }
   0x6   :  { %v106_v14 = vsub.f32 %v24_v4, %v105_v9  ;;  %686 = vmatprep.mubr.f32.mxu1 %v105_v9  ;;  %v135_v17 = vand.u32 4294901760, %v33_v13  ;;  %677 = vmatpush3.msra.mxu0 %v70_v8  ;;  %s635_s27 = sshll.u32 %s749_s26, 4  ;;  %s636_s27 = int_to_ptr.vmem [resolvable:$true] %s635_s27 }
   0x7   :  { %v126_v18 = vsub.f32 %v30_v11, %v125_v12  ;;  %v178_v20 = vand.u32 4294901760, %v177_v15  ;;  %692 = vmatprep.subr.mxu0 %v177_v15  ;;  %v117_v21 = vand.u32 4294901760, %v116_v16  ;;  %s727_s30 = scalar_lea.vmem %s636_s27, 512  ;;  %p732_p1 = scmp.lt.s32.totalorder %s636_s27, %s636_s27 }
   0x8   :  { %v107_v19 = vand.u32 4294901760, %v106_v14  ;;  %v136_v22 = vsub.f32 %v33_v13, %v135_v17  ;;  %p728_p0 = scmp.ne.s32.totalorder %s636_s27, %s727_s30  ;;  %p733_p2 = scmp.lt.s32.totalorder %s727_s30, %s727_s30 }
   0x9   :  { %v127_v23 = vand.u32 4294901760, %v126_v18  ;;  %v179_v25 = vsub.f32 %v177_v15, %v178_v20  ;;  %v118_v26 = vsub.f32 %v116_v16, %v117_v21 }
   0xa   :  { %v108_v24 = vsub.f32 %v106_v14, %v107_v19  ;;  %v137_v27 = vand.u32 4294901760, %v136_v22  ;;  %p734_p3 = por %p733_p2, %p732_p1 }
   0xb   :  { %v128_v28 = vsub.f32 %v126_v18, %v127_v23  ;;  %v180_v30 = vand.u32 4294901760, %v179_v25  ;;  %v119_v31 = vand.u32 4294901760, %v118_v26 }
   0xc   :  { %v109_v29 = vand.u32 4294901760, %v108_v24  ;;  %v138_v32 = vsub.f32 %v136_v22, %v137_v27  ;;  %p735_p4 = pnand %p734_p3, %p728_p0 }
   0xd   :  { %v129_v33 = vand.u32 4294901760, %v128_v28  ;;  %684 = vmatprep.subr.mxu1 %v180_v30 }
   0xe   :  { %678 = vmatprep.mubr.f32.mxu0 %v109_v29  ;;  %685 = vmatpush3.msra.mxu1 %v180_v30  ;;  %v139_v34 = vand.u32 4294901760, %v138_v32 }
   0xf   :  { %679 = vmatmul.mubr.f32.vlgmr.msra.gmra.mxu0 %v119_v31  ;;  %687 = vmatmul.mubr.f32.vlgmr.msra.gmra.mxu1 %v115_v10 }
  0x10   :  { %693 = vmatpush3.msra.mxu0 %v177_v15  ;;  %700 = vmatprep.subr.mxu1 %v70_v8 }
  0x11   :  { %681 = vmatprep.mubr.f32.mxu0 %v129_v33  ;;  %701 = vmatpush3.msra.mxu1 %v70_v8 }
  0x12   :  { %689 = vmatprep.mubr.f32.mxu1 %v125_v12  ;;  %708 = vmatprep.subr.mxu0 %v178_v20 }
  0x13   :  { %682 = vmatmul.mubr.f32.gmra.mxu0 %v139_v34  ;;  %690 = vmatmul.mubr.f32.gmra.mxu1 %v135_v17 }
  0x14   :  { %694 = vmatprep.mubr.f32.mxu0 %v106_v14  ;;  %702 = vmatprep.mubr.f32.mxu1 %v107_v19  ;;  %v621_v19 = vld [vmem:[%s802_s0 + $0x18] sm:$0xff] }
  0x15   :  { %716 = vmatprep.subr.mxu1 %v70_v8 }
  0x17   :  { %695 = vmatmul.mubr.f32.vlgmr.msra.gmra.mxu0 %v116_v16  ;;  %703 = vmatmul.mubr.f32.vlgmr.msra.gmra.mxu1 %v117_v21 }
  0x18   :  { %709 = vmatpush3.msra.mxu0 %v178_v20  ;;  %717 = vmatpush3.msra.mxu1 %v70_v8 }
  0x19   :  { %697 = vmatprep.mubr.f32.mxu0 %v126_v18  ;;  %705 = vmatprep.mubr.f32.mxu1 %v127_v23  ;;  %v620_v23 = vld [vmem:[%s802_s0 + $0x10] sm:$0xff] }
  0x1b   :  { %698 = vmatmul.mubr.f32.gmra.mxu0 %v136_v22  ;;  %706 = vmatmul.mubr.f32.gmra.mxu1 %v137_v27 }
  0x1c   :  { %710 = vmatprep.mubr.f32.mxu0 %v105_v9  ;;  %718 = vmatprep.mubr.f32.mxu1 %v105_v9 }
  0x1f   :  { %711 = vmatmul.mubr.f32.vlgmr.msra.gmra.mxu0 %v115_v10  ;;  %719 = vmatmul.mubr.f32.vlgmr.msra.gmra.mxu1 %v115_v10 }
  0x20   :  { %713 = vmatprep.mubr.f32.mxu0 %v125_v12  ;;  %721 = vmatprep.mubr.f32.mxu1 %v125_v12  ;;  %v618_v12 = vld [vmem:[%s802_s0] sm:$0xff] }
  0x23   :  { %714 = vmatmul.mubr.f32.gmra.mxu0 %v135_v17  ;;  %722 = vmatmul.mubr.f32.gmra.mxu1 %v135_v17 }
  0xcf   :  { %v680_v35 = vpop.f32.mrf.mxu0  ;;  %v688_v36 = vpop.f32.mrf.mxu1 }
  0xd0   :  { %v224_v44 = vadd.f32 %v688_v36, %v680_v35 }
  0xd1   :  { %v111_v37 = vpop.f32.mrf.mxu0  ;;  %v217_v38 = vpop.f32.mrf.mxu1 }
  0xd2   :  { %v218_v47 = vadd.f32 %v217_v38, %v111_v37 }
  0xd3   :  { %v683_v39 = vpop.f32.mrf.mxu0  ;;  %v691_v40 = vpop.f32.mrf.mxu1 }
  0xd4   :  { %v236_v51 = vadd.f32 %v691_v40, %v683_v39 }
  0xd5   :  { %v131_v41 = vpop.f32.mrf.mxu0  ;;  %v229_v42 = vpop.f32.mrf.mxu1 }
  0xd6   :  { %v230_v55 = vadd.f32 %v229_v42, %v131_v41 }
  0xd7   :  { %v696_v43 = vpop.f32.mrf.mxu0  ;;  %v704_v45 = vpop.f32.mrf.mxu1 }
  0xd8   :  { %v317_v48 = vadd.f32 %v696_v43, %v224_v44 }
  0xd9   :  { %v309_v46 = vpop.f32.mrf.mxu0  ;;  %v404_v49 = vpop.f32.mrf.mxu1 }
  0xda   :  { %v310_v52 = vadd.f32 %v309_v46, %v218_v47  ;;  %v413_v56 = vadd.f32 %v704_v45, %v317_v48 }
  0xdb   :  { %v699_v50 = vpop.f32.mrf.mxu0  ;;  %v707_v53 = vpop.f32.mrf.mxu1 }
  0xdc   :  { %v331_v57 = vadd.f32 %v699_v50, %v236_v51  ;;  %v405_v60 = vadd.f32 %v404_v49, %v310_v52 }
  0xdd   :  { %v323_v54 = vpop.f32.mrf.mxu0  ;;  %v420_v58 = vpop.f32.mrf.mxu1 }
  0xde   :  { %v324_v61 = vadd.f32 %v323_v54, %v230_v55  ;;  %v429_v1 = vadd.f32 %v707_v53, %v331_v57 }
  0xdf   :  { %v712_v59 = vpop.f32.mrf.mxu0  ;;  %v720_v63 = vpop.f32.mrf.mxu1 }
  0xe0   :  { %v509_v62 = vadd.f32 %v712_v59, %v413_v56  ;;  %v421_v7 = vadd.f32 %v420_v58, %v324_v61 }
  0xe1   :  { %v502_v0 = vpop.f32.mrf.mxu0  ;;  %v592_v4 = vpop.f32.mrf.mxu1 }
  0xe2   :  { %v599_v2 = vadd.f32 %v720_v63, %v509_v62  ;;  %v503_v3 = vadd.f32 %v502_v0, %v405_v60 }
  0xe3   :  { %v715_v6 = vpop.f32.mrf.mxu0  ;;  %v723_v11 = vpop.f32.mrf.mxu1 }
  0xe4   :  { %v615_v8 = vmul.f32 2.0, %v599_v2  ;;  %v593_v9 = vadd.f32 %v592_v4, %v503_v3  ;;  %v521_v10 = vadd.f32 %v715_v6, %v429_v1 }
  0xe5   :  { %v514_v13 = vpop.f32.mrf.mxu0  ;;  %v604_v18 = vpop.f32.mrf.mxu1 }
  0xe6   :  { %v623_v14 = vadd.f32 %v619_v5, %v615_v8  ;;  %v614_v15 = vmul.f32 2.0, %v593_v9  ;;  %v611_v16 = vadd.f32 %v723_v11, %v521_v10  ;;  %v515_v17 = vadd.f32 %v514_v13, %v421_v7 }
  0xe8   :  { %627 = vst [vmem:[#allocation2 + $0x8] sm:$0xff] %v623_v14  ;;  %v622_v20 = vadd.f32 %v618_v12, %v614_v15  ;;  %v617_v21 = vmul.f32 2.0, %v611_v16  ;;  %v605_v22 = vadd.f32 %v604_v18, %v515_v17 }
  0xea   :  { %626 = vst [vmem:[#allocation2] sm:$0xff] %v622_v20  ;;  %v625_v24 = vadd.f32 %v621_v19, %v617_v21  ;;  %v616_v25 = vmul.f32 2.0, %v605_v22 }
  0xec   :  { %629 = vst [vmem:[#allocation2 + $0x18] sm:$0xff] %v625_v24  ;;  %v624_v26 = vadd.f32 %v620_v23, %v616_v25 }
  0xee   :  { %628 = vst [vmem:[#allocation2 + $0x10] sm:$0xff] %v624_v26 }
  0xef   :  { %738 = shalt.err (!%p735_p4)
}
  0xf0   :  { %s750_s4 = smov 128   ;;  %s751_s5 = smov 8  }
  0xf1   :  { %641 = dma.vmem_to_hbm [thread:$0]  %s636_s27, 512, %s805_s3, [#allocation3], %s750_s4, %s750_s4, %s751_s5  }
  0xf2   :  { %747 = dma.done.wait [#allocation3], 512  }
  0xf3   :  { %748 = vsyncadd [#allocation3], 4294966784 }
  0xf4   :  { %645 = vsyncpa [#allocation3], 1 }

</bundles_post_ra>
